<compile_context>
chip_gen: v7x
topology: tpu7x:2x2x1
jax: 0.10.0
libtpu: 0.0.40
codegen_flags: <defaults>
</compile_context>

<pallas_src>
import functools
import math

import jax
import jax.numpy as jnp
from jax import lax
from jax.experimental import pallas as pl
from jax.experimental.pallas import tpu as pltpu


# Budget VMEM against v7x's 64 MiB physical (leave headroom for double-buffering).
_VMEM_LIMIT = 48 * 1024 * 1024


# ---------------------------------------------------------------------------
# Kernel 1: row-tiled dense layer   y = x @ W + b     (W already (E_in, E_out))
# ---------------------------------------------------------------------------
def _linear_kernel(x_ref, w_ref, b_ref, o_ref):
    x = x_ref[...]                        # (TM, E_in)
    w = w_ref[...]                        # (E_in, E_out) — pre-transposed, no w.T
    b = b_ref[...]                        # (1, E_out)
    y = jnp.dot(x, w, preferred_element_type=jnp.float32) + b
    o_ref[...] = y.astype(o_ref.dtype)


def linear(x2d, w_t, b, *, row_tile=256):
    """x2d: (M, E_in), w_t: (E_in, E_out) pre-transposed, b: (E_out,) -> (M, E_out)."""
    M, E_in = x2d.shape
    E_out = w_t.shape[1]
    # 256 is a multiple of 128 -> fine for v5e's 128-granular MXU and v6e/v7x.
    tm = M if M <= row_tile else row_tile
    grid = (pl.cdiv(M, tm),)
    b2d = b.reshape(1, E_out)
    return pl.pallas_call(
        _linear_kernel,
        out_shape=jax.ShapeDtypeStruct((M, E_out), x2d.dtype),
        grid_spec=pltpu.PrefetchScalarGridSpec(
            num_scalar_prefetch=0,
            grid=grid,
            in_specs=[
                pl.BlockSpec((tm, E_in), lambda i: (i, 0)),      # activation tile
                pl.BlockSpec((E_in, E_out), lambda i: (0, 0)),   # weight resident
                pl.BlockSpec((1, E_out), lambda i: (0, 0)),      # bias resident
            ],
            out_specs=pl.BlockSpec((tm, E_out), lambda i: (i, 0)),
        ),
        compiler_params=pltpu.CompilerParams(
            dimension_semantics=("parallel",),
            vmem_limit_bytes=_VMEM_LIMIT),
    )(x2d, w_t, b2d)


# ---------------------------------------------------------------------------
# Kernel 2: multi-head scaled dot-product attention, one batch element per step.
# Heads are sliced inside the kernel from the (S, E) slab; the output is written
# back as a single lane-dense (S, E) tile (no D-wide masked stores).
# The 1/sqrt(D) scale is already folded into the Q projection.
# ---------------------------------------------------------------------------
def _mha_kernel(q_ref, k_ref, v_ref, o_ref, *, num_heads):
    q = q_ref[0]          # (Sq, E)
    k = k_ref[0]          # (Sk, E)
    v = v_ref[0]          # (Sk, E)
    E = q.shape[-1]
    D = E // num_heads

    outs = []
    for h in range(num_heads):            # static unroll; H is small and static
        lo, hi = h * D, (h + 1) * D
        qh = q[:, lo:hi]                  # (Sq, D)
        kh = k[:, lo:hi]                  # (Sk, D)
        vh = v[:, lo:hi]                  # (Sk, D)
        # q @ k^T without materializing a transpose: contract last dim of both.
        s = lax.dot_general(qh, kh, (((1,), (1,)), ((), ())),
                            preferred_element_type=jnp.float32)   # (Sq, Sk)
        m = jnp.max(s, axis=-1, keepdims=True)
        e = jnp.exp(s - m)
        denom = jnp.sum(e, axis=-1, keepdims=True)
        p = e * pl.reciprocal(denom, approx=True)                 # EUP, not VALU divide
        outs.append(jnp.dot(p.astype(vh.dtype), vh,
                            preferred_element_type=jnp.float32))  # (Sq, D)

    # Single lane-dense store of the full (Sq, E) context tile.
    o_ref[0] = jnp.concatenate(outs, axis=-1).astype(o_ref.dtype)


def _attention(q, k, v, num_heads):
    """q: (B, Sq, E); k, v: (B, Sk, E)  ->  (B, Sq, E)."""
    B, Sq, E = q.shape
    Sk = k.shape[1]
    kernel = functools.partial(_mha_kernel, num_heads=num_heads)
    q_spec = pl.BlockSpec((1, Sq, E), lambda b: (b, 0, 0))
    kv_spec = pl.BlockSpec((1, Sk, E), lambda b: (b, 0, 0))   # separate spec: Sk may != Sq
    return pl.pallas_call(
        kernel,
        out_shape=jax.ShapeDtypeStruct((B, Sq, E), q.dtype),
        grid_spec=pltpu.PrefetchScalarGridSpec(
            num_scalar_prefetch=0,
            grid=(B,),
            in_specs=[q_spec, kv_spec, kv_spec],
            out_specs=q_spec,
        ),
        compiler_params=pltpu.CompilerParams(
            dimension_semantics=("parallel",),
            vmem_limit_bytes=_VMEM_LIMIT),
    )(q, k, v)


# ---------------------------------------------------------------------------
# MultiHeadAttention forward (glue in plain JAX, hot paths in Pallas)
# ---------------------------------------------------------------------------
def init_params(key, embedding_dim):
    """Deterministic parameter init (matches PyTorch nn.Linear shapes/convention)."""
    ks = jax.random.split(key, 8)
    bound = 1.0 / math.sqrt(embedding_dim)

    def lin(kw, kb):
        w = jax.random.uniform(kw, (embedding_dim, embedding_dim),
                               jnp.float32, -bound, bound)
        b = jax.random.uniform(kb, (embedding_dim,), jnp.float32, -bound, bound)
        return w, b

    return {
        "q": lin(ks[0], ks[1]),
        "k": lin(ks[2], ks[3]),
        "v": lin(ks[4], ks[5]),
        "out": lin(ks[6], ks[7]),
    }


def multi_head_attention(params, query, key, value, num_heads):
    B, Sq, E = query.shape
    Sk = key.shape[1]
    assert E % num_heads == 0, "embedding_dim must be divisible by num_heads"
    D = E // num_heads
    scale = 1.0 / math.sqrt(D)

    wq, bq = params["q"]
    wk, bk = params["k"]
    wv, bv = params["v"]
    wo, bo = params["out"]

    # Pre-transpose PyTorch (out, in) weights once -> (in, out); fold the
    # 1/sqrt(D) attention scale into the query projection.
    wq_t = (wq * scale).T
    bq_s = bq * scale
    wk_t = wk.T
    wv_t = wv.T
    wo_t = wo.T

    if (query is key) and (key is value):
        # Self-attention: fused QKV projection — single (M, E) x (E, 3E) matmul,
        # activation read from HBM once, larger N fills the MXU lanes better.
        w_qkv = jnp.concatenate([wq_t, wk_t, wv_t], axis=1)          # (E, 3E)
        b_qkv = jnp.concatenate([bq_s, bk, bv], axis=0)              # (3E,)
        qkv = linear(query.reshape(B * Sq, E), w_qkv, b_qkv)         # (M, 3E)
        qkv = qkv.reshape(B, Sq, 3 * E)
        q = qkv[..., :E]
        k = qkv[..., E:2 * E]
        v = qkv[..., 2 * E:]
    else:
        # Cross-attention: distinct activations, project separately.
        q = linear(query.reshape(B * Sq, E), wq_t, bq_s).reshape(B, Sq, E)
        k = linear(key.reshape(B * Sk, E), wk_t, bk).reshape(B, Sk, E)
        v = linear(value.reshape(B * Sk, E), wv_t, bv).reshape(B, Sk, E)

    # Attention runs directly on (B, S, E); heads are sliced inside the kernel,
    # so no (B,S,H,D)<->(B,H,S,D) transposes round-trip HBM.
    ctx = _attention(q, k, v, num_heads)                             # (B, Sq, E)

    out = linear(ctx.reshape(B * Sq, E), wo_t, bo)
    return out.reshape(B, Sq, E)


# ---------------------------------------------------------------------------
# Pure-JAX reference for sanity checking
# ---------------------------------------------------------------------------
def reference_mha(params, query, key, value, num_heads):
    def lin(x, w, b):
        return x @ w.T + b

    B, Sq, E = query.shape
    Sk = key.shape[1]
    D = E // num_heads
    q = lin(query, *params["q"]).reshape(B, Sq, num_heads, D).transpose(0, 2, 1, 3)
    k = lin(key, *params["k"]).reshape(B, Sk, num_heads, D).transpose(0, 2, 1, 3)
    v = lin(value, *params["v"]).reshape(B, Sk, num_heads, D).transpose(0, 2, 1, 3)
    attn = jax.nn.softmax(
        jnp.einsum("bhqd,bhkd->bhqk", q / math.sqrt(D), k), axis=-1)
    scores = jnp.einsum("bhqk,bhkd->bhqd", attn, v)
    merged = scores.transpose(0, 2, 1, 3).reshape(B, Sq, E)
    return lin(merged, *params["out"])


if __name__ == "__main__":
    B, S, E, H = 2, 8, 32, 4
    root = jax.random.PRNGKey(0)
    k_params, k_x, k_kc, k_vc = jax.random.split(root, 4)

    params = init_params(k_params, E)

    # --- self-attention (fused QKV path): query = key = value -----------------
    x = jax.random.normal(k_x, (B, S, E), jnp.float32)
    self_fn = jax.jit(lambda p, a: multi_head_attention(p, a, a, a, H))
    out_self = jax.block_until_ready(self_fn(params, x))
    ref_self = reference_mha(params, x, x, x, H)
    assert out_self.shape == (B, S, E)
    assert jnp.allclose(out_self, ref_self, atol=2e-3, rtol=2e-3), \
        "self-attention mismatch vs reference"

    # --- cross-attention (separate projections, Sk != Sq) ---------------------
    Sk = 16
    kx = jax.random.normal(k_kc, (B, Sk, E), jnp.float32)
    vx = jax.random.normal(k_vc, (B, Sk, E), jnp.float32)
    cross_fn = jax.jit(lambda p, q, k, v: multi_head_attention(p, q, k, v, H))
    out_cross = jax.block_until_ready(cross_fn(params, x, kx, vx))
    ref_cross = reference_mha(params, x, kx, vx, H)
    assert out_cross.shape == (B, S, E)
    assert jnp.allclose(out_cross, ref_cross, atol=2e-3, rtol=2e-3), \
        "cross-attention mismatch vs reference"

    print("KERNEL_OK")
</pallas_src>

<mosaic_0001>
module attributes {stable_mosaic.version = 11 : i64} {
  func.func @_linear_kernel(%arg0: i32, %arg1: memref<16x32xf32, #tpu.memory_space<vmem>>, %arg2: memref<32x96xf32, #tpu.memory_space<vmem>>, %arg3: memref<1x96xf32, #tpu.memory_space<vmem>>, %arg4: memref<16x96xf32, #tpu.memory_space<vmem>>) attributes {dimension_semantics = [#tpu.dimension_semantics<parallel>], iteration_bounds = array<i64: 1>, scalar_prefetch = 0 : i64, scratch_operands = 0 : i64, tpu.core_type = #tpu.core_type<tc>, window_params = [{transform_indices = @transform_0, window_bounds = array<i64: 16, 32>}, {pipeline_mode = #tpu.pipeline_mode<synchronous>, transform_indices = @transform_1, window_bounds = array<i64: 32, 96>}, {pipeline_mode = #tpu.pipeline_mode<synchronous>, transform_indices = @transform_2, window_bounds = array<i64: 1, 96>}, {transform_indices = @transform_3, window_bounds = array<i64: 16, 96>}]} {
    %c0 = arith.constant 0 : index
    %c0_0 = arith.constant 0 : index
    %0 = vector.load %arg1[%c0, %c0_0] : memref<16x32xf32, #tpu.memory_space<vmem>>, vector<16x32xf32>
    %c0_1 = arith.constant 0 : index
    %c0_2 = arith.constant 0 : index
    %1 = vector.load %arg2[%c0_1, %c0_2] : memref<32x96xf32, #tpu.memory_space<vmem>>, vector<32x96xf32>
    %c0_3 = arith.constant 0 : index
    %c0_4 = arith.constant 0 : index
    %2 = vector.load %arg3[%c0_3, %c0_4] : memref<1x96xf32, #tpu.memory_space<vmem>>, vector<1x96xf32>
    %cst = arith.constant dense<0.000000e+00> : vector<16x96xf32>
    %3 = tpu.matmul %0, %1, %cst {dimension_numbers = #tpu.dot_dimension_numbers<[1], [0], [0], [1], [0, 0, 1, 1], [], []>} : vector<16x32xf32>, vector<32x96xf32>, vector<16x96xf32> -> vector<16x96xf32>
    %4 = vector.broadcast %2 : vector<1x96xf32> to vector<16x96xf32>
    %5 = arith.addf %3, %4 : vector<16x96xf32>
    %c0_5 = arith.constant 0 : index
    %c0_6 = arith.constant 0 : index
    %6 = vector.load %arg4[%c0_5, %c0_6] : memref<16x96xf32, #tpu.memory_space<vmem>>, vector<16x96xf32>
    tpu.vector_store %arg4[%c0_5, %c0_6], %5 {strides = array<i32>} : memref<16x96xf32, #tpu.memory_space<vmem>>, vector<16x96xf32>,
    return
  }
  func.func @transform_0(%arg0: i32) -> (i32, i32) {
    %c0_i32 = arith.constant 0 : i32
    %c0_i32_0 = arith.constant 0 : i32
    return %arg0, %c0_i32 : i32, i32
  }
  func.func @transform_1(%arg0: i32) -> (i32, i32) {
    %c0_i32 = arith.constant 0 : i32
    %c0_i32_0 = arith.constant 0 : i32
    %c0_i32_1 = arith.constant 0 : i32
    return %c0_i32, %c0_i32_0 : i32, i32
  }
  func.func @transform_2(%arg0: i32) -> (i32, i32) {
    %c0_i32 = arith.constant 0 : i32
    %c0_i32_0 = arith.constant 0 : i32
    %c0_i32_1 = arith.constant 0 : i32
    return %c0_i32, %c0_i32_0 : i32, i32
  }
  func.func @transform_3(%arg0: i32) -> (i32, i32) {
    %c0_i32 = arith.constant 0 : i32
    %c0_i32_0 = arith.constant 0 : i32
    return %arg0, %c0_i32 : i32, i32
  }
}

module attributes {stable_mosaic.version = 11 : i64} {
  func.func @_linear_kernel(%arg0: i32, %arg1: memref<16x32xf32, #tpu.memory_space<vmem>>, %arg2: memref<32x32xf32, #tpu.memory_space<vmem>>, %arg3: memref<1x32xf32, #tpu.memory_space<vmem>>, %arg4: memref<16x32xf32, #tpu.memory_space<vmem>>) attributes {dimension_semantics = [#tpu.dimension_semantics<parallel>], iteration_bounds = array<i64: 1>, scalar_prefetch = 0 : i64, scratch_operands = 0 : i64, tpu.core_type = #tpu.core_type<tc>, window_params = [{transform_indices = @transform_0, window_bounds = array<i64: 16, 32>}, {pipeline_mode = #tpu.pipeline_mode<synchronous>, transform_indices = @transform_1, window_bounds = array<i64: 32, 32>}, {pipeline_mode = #tpu.pipeline_mode<synchronous>, transform_indices = @transform_2, window_bounds = array<i64: 1, 32>}, {transform_indices = @transform_3, window_bounds = array<i64: 16, 32>}]} {
    %c0 = arith.constant 0 : index
    %c0_0 = arith.constant 0 : index
    %0 = vector.load %arg1[%c0, %c0_0] : memref<16x32xf32, #tpu.memory_space<vmem>>, vector<16x32xf32>
    %c0_1 = arith.constant 0 : index
    %c0_2 = arith.constant 0 : index
    %1 = vector.load %arg2[%c0_1, %c0_2] : memref<32x32xf32, #tpu.memory_space<vmem>>, vector<32x32xf32>
    %c0_3 = arith.constant 0 : index
    %c0_4 = arith.constant 0 : index
    %2 = vector.load %arg3[%c0_3, %c0_4] : memref<1x32xf32, #tpu.memory_space<vmem>>, vector<1x32xf32>
    %cst = arith.constant dense<0.000000e+00> : vector<16x32xf32>
    %3 = tpu.matmul %0, %1, %cst {dimension_numbers = #tpu.dot_dimension_numbers<[1], [0], [0], [1], [0, 0, 1, 1], [], []>} : vector<16x32xf32>, vector<32x32xf32>, vector<16x32xf32> -> vector<16x32xf32>
    %4 = vector.broadcast %2 : vector<1x32xf32> to vector<16x32xf32>
    %5 = arith.addf %3, %4 : vector<16x32xf32>
    %c0_5 = arith.constant 0 : index
    %c0_6 = arith.constant 0 : index
    %6 = vector.load %arg4[%c0_5, %c0_6] : memref<16x32xf32, #tpu.memory_space<vmem>>, vector<16x32xf32>
    tpu.vector_store %arg4[%c0_5, %c0_6], %5 {strides = array<i32>} : memref<16x32xf32, #tpu.memory_space<vmem>>, vector<16x32xf32>,
    return
  }
  func.func @transform_0(%arg0: i32) -> (i32, i32) {
    %c0_i32 = arith.constant 0 : i32
    %c0_i32_0 = arith.constant 0 : i32
    return %arg0, %c0_i32 : i32, i32
  }
  func.func @transform_1(%arg0: i32) -> (i32, i32) {
    %c0_i32 = arith.constant 0 : i32
    %c0_i32_0 = arith.constant 0 : i32
    %c0_i32_1 = arith.constant 0 : i32
    return %c0_i32, %c0_i32_0 : i32, i32
  }
  func.func @transform_2(%arg0: i32) -> (i32, i32) {
    %c0_i32 = arith.constant 0 : i32
    %c0_i32_0 = arith.constant 0 : i32
    %c0_i32_1 = arith.constant 0 : i32
    return %c0_i32, %c0_i32_0 : i32, i32
  }
  func.func @transform_3(%arg0: i32) -> (i32, i32) {
    %c0_i32 = arith.constant 0 : i32
    %c0_i32_0 = arith.constant 0 : i32
    return %arg0, %c0_i32 : i32, i32
  }
}

module attributes {stable_mosaic.version = 11 : i64} {
  func.func @_mha_kernel(%arg0: i32, %arg1: memref<1x8x32xf32, #tpu.memory_space<vmem>>, %arg2: memref<1x8x32xf32, #tpu.memory_space<vmem>>, %arg3: memref<1x8x32xf32, #tpu.memory_space<vmem>>, %arg4: memref<1x8x32xf32, #tpu.memory_space<vmem>>) attributes {dimension_semantics = [#tpu.dimension_semantics<parallel>], iteration_bounds = array<i64: 2>, scalar_prefetch = 0 : i64, scratch_operands = 0 : i64, tpu.core_type = #tpu.core_type<tc>, window_params = [{transform_indices = @transform_0, window_bounds = array<i64: 1, 8, 32>}, {transform_indices = @transform_1, window_bounds = array<i64: 1, 8, 32>}, {transform_indices = @transform_2, window_bounds = array<i64: 1, 8, 32>}, {transform_indices = @transform_3, window_bounds = array<i64: 1, 8, 32>}]} {
    %c0 = arith.constant 0 : index
    %c0_0 = arith.constant 0 : index
    %c0_1 = arith.constant 0 : index
    %0 = vector.load %arg1[%c0, %c0_0, %c0_1] : memref<1x8x32xf32, #tpu.memory_space<vmem>>, vector<1x8x32xf32>
    %1 = vector.shape_cast %0 : vector<1x8x32xf32> to vector<8x32xf32>
    %c0_2 = arith.constant 0 : index
    %c0_3 = arith.constant 0 : index
    %c0_4 = arith.constant 0 : index
    %2 = vector.load %arg2[%c0_2, %c0_3, %c0_4] : memref<1x8x32xf32, #tpu.memory_space<vmem>>, vector<1x8x32xf32>
    %3 = vector.shape_cast %2 : vector<1x8x32xf32> to vector<8x32xf32>
    %c0_5 = arith.constant 0 : index
    %c0_6 = arith.constant 0 : index
    %c0_7 = arith.constant 0 : index
    %4 = vector.load %arg3[%c0_5, %c0_6, %c0_7] : memref<1x8x32xf32, #tpu.memory_space<vmem>>, vector<1x8x32xf32>
    %5 = vector.shape_cast %4 : vector<1x8x32xf32> to vector<8x32xf32>
    %6 = vector.extract_strided_slice %1 {offsets = [0, 0], sizes = [8, 8], strides = [1, 1]} : vector<8x32xf32> to vector<8x8xf32>
    %7 = vector.extract_strided_slice %3 {offsets = [0, 0], sizes = [8, 8], strides = [1, 1]} : vector<8x32xf32> to vector<8x8xf32>
    %8 = vector.extract_strided_slice %5 {offsets = [0, 0], sizes = [8, 8], strides = [1, 1]} : vector<8x32xf32> to vector<8x8xf32>
    %cst = arith.constant dense<0.000000e+00> : vector<8x8xf32>
    %9 = tpu.matmul %6, %7, %cst {dimension_numbers = #tpu.dot_dimension_numbers<[1], [1], [0], [0], [0, 0, 1, 0], [], []>} : vector<8x8xf32>, vector<8x8xf32>, vector<8x8xf32> -> vector<8x8xf32>
    %cst_8 = arith.constant dense<0xFF800000> : vector<8xf32>
    %10 = vector.multi_reduction <maximumf>, %9, %cst_8 [1] : vector<8x8xf32> to vector<8xf32>
    %11 = vector.shape_cast %10 : vector<8xf32> to vector<8x1xf32>
    %12 = vector.broadcast %11 : vector<8x1xf32> to vector<8x8xf32>
    %13 = arith.subf %9, %12 : vector<8x8xf32>
    %14 = math.exp %13 : vector<8x8xf32>
    %cst_9 = arith.constant dense<0.000000e+00> : vector<8xf32>
    %15 = vector.multi_reduction <add>, %14, %cst_9 [1] : vector<8x8xf32> to vector<8xf32>
    %16 = vector.shape_cast %15 : vector<8xf32> to vector<8x1xf32>
    %17 = tpu.reciprocal %16 {approx = true} : vector<8x1xf32> -> vector<8x1xf32>
    %18 = vector.broadcast %17 : vector<8x1xf32> to vector<8x8xf32>
    %19 = arith.mulf %14, %18 : vector<8x8xf32>
    %cst_10 = arith.constant dense<0.000000e+00> : vector<8x8xf32>
    %20 = tpu.matmul %19, %8, %cst_10 {dimension_numbers = #tpu.dot_dimension_numbers<[1], [0], [0], [1], [0, 0, 1, 1], [], []>} : vector<8x8xf32>, vector<8x8xf32>, vector<8x8xf32> -> vector<8x8xf32>
    %21 = vector.extract_strided_slice %1 {offsets = [0, 8], sizes = [8, 8], strides = [1, 1]} : vector<8x32xf32> to vector<8x8xf32>
    %22 = vector.extract_strided_slice %3 {offsets = [0, 8], sizes = [8, 8], strides = [1, 1]} : vector<8x32xf32> to vector<8x8xf32>
    %23 = vector.extract_strided_slice %5 {offsets = [0, 8], sizes = [8, 8], strides = [1, 1]} : vector<8x32xf32> to vector<8x8xf32>
    %cst_11 = arith.constant dense<0.000000e+00> : vector<8x8xf32>
    %24 = tpu.matmul %21, %22, %cst_11 {dimension_numbers = #tpu.dot_dimension_numbers<[1], [1], [0], [0], [0, 0, 1, 0], [], []>} : vector<8x8xf32>, vector<8x8xf32>, vector<8x8xf32> -> vector<8x8xf32>
    %cst_12 = arith.constant dense<0xFF800000> : vector<8xf32>
    %25 = vector.multi_reduction <maximumf>, %24, %cst_12 [1] : vector<8x8xf32> to vector<8xf32>
    %26 = vector.shape_cast %25 : vector<8xf32> to vector<8x1xf32>
    %27 = vector.broadcast %26 : vector<8x1xf32> to vector<8x8xf32>
    %28 = arith.subf %24, %27 : vector<8x8xf32>
    %29 = math.exp %28 : vector<8x8xf32>
    %cst_13 = arith.constant dense<0.000000e+00> : vector<8xf32>
    %30 = vector.multi_reduction <add>, %29, %cst_13 [1] : vector<8x8xf32> to vector<8xf32>
    %31 = vector.shape_cast %30 : vector<8xf32> to vector<8x1xf32>
    %32 = tpu.reciprocal %31 {approx = true} : vector<8x1xf32> -> vector<8x1xf32>
    %33 = vector.broadcast %32 : vector<8x1xf32> to vector<8x8xf32>
    %34 = arith.mulf %29, %33 : vector<8x8xf32>
    %cst_14 = arith.constant dense<0.000000e+00> : vector<8x8xf32>
    %35 = tpu.matmul %34, %23, %cst_14 {dimension_numbers = #tpu.dot_dimension_numbers<[1], [0], [0], [1], [0, 0, 1, 1], [], []>} : vector<8x8xf32>, vector<8x8xf32>, vector<8x8xf32> -> vector<8x8xf32>
    %36 = vector.extract_strided_slice %1 {offsets = [0, 16], sizes = [8, 8], strides = [1, 1]} : vector<8x32xf32> to vector<8x8xf32>
    %37 = vector.extract_strided_slice %3 {offsets = [0, 16], sizes = [8, 8], strides = [1, 1]} : vector<8x32xf32> to vector<8x8xf32>
    %38 = vector.extract_strided_slice %5 {offsets = [0, 16], sizes = [8, 8], strides = [1, 1]} : vector<8x32xf32> to vector<8x8xf32>
    %cst_15 = arith.constant dense<0.000000e+00> : vector<8x8xf32>
    %39 = tpu.matmul %36, %37, %cst_15 {dimension_numbers = #tpu.dot_dimension_numbers<[1], [1], [0], [0], [0, 0, 1, 0], [], []>} : vector<8x8xf32>, vector<8x8xf32>, vector<8x8xf32> -> vector<8x8xf32>
    %cst_16 = arith.constant dense<0xFF800000> : vector<8xf32>
    %40 = vector.multi_reduction <maximumf>, %39, %cst_16 [1] : vector<8x8xf32> to vector<8xf32>
    %41 = vector.shape_cast %40 : vector<8xf32> to vector<8x1xf32>
    %42 = vector.broadcast %41 : vector<8x1xf32> to vector<8x8xf32>
    %43 = arith.subf %39, %42 : vector<8x8xf32>
    %44 = math.exp %43 : vector<8x8xf32>
    %cst_17 = arith.constant dense<0.000000e+00> : vector<8xf32>
    %45 = vector.multi_reduction <add>, %44, %cst_17 [1] : vector<8x8xf32> to vector<8xf32>
    %46 = vector.shape_cast %45 : vector<8xf32> to vector<8x1xf32>
    %47 = tpu.reciprocal %46 {approx = true} : vector<8x1xf32> -> vector<8x1xf32>
    %48 = vector.broadcast %47 : vector<8x1xf32> to vector<8x8xf32>
    %49 = arith.mulf %44, %48 : vector<8x8xf32>
    %cst_18 = arith.constant dense<0.000000e+00> : vector<8x8xf32>
    %50 = tpu.matmul %49, %38, %cst_18 {dimension_numbers = #tpu.dot_dimension_numbers<[1], [0], [0], [1], [0, 0, 1, 1], [], []>} : vector<8x8xf32>, vector<8x8xf32>, vector<8x8xf32> -> vector<8x8xf32>
    %51 = vector.extract_strided_slice %1 {offsets = [0, 24], sizes = [8, 8], strides = [1, 1]} : vector<8x32xf32> to vector<8x8xf32>
    %52 = vector.extract_strided_slice %3 {offsets = [0, 24], sizes = [8, 8], strides = [1, 1]} : vector<8x32xf32> to vector<8x8xf32>
    %53 = vector.extract_strided_slice %5 {offsets = [0, 24], sizes = [8, 8], strides = [1, 1]} : vector<8x32xf32> to vector<8x8xf32>
    %cst_19 = arith.constant dense<0.000000e+00> : vector<8x8xf32>
    %54 = tpu.matmul %51, %52, %cst_19 {dimension_numbers = #tpu.dot_dimension_numbers<[1], [1], [0], [0], [0, 0, 1, 0], [], []>} : vector<8x8xf32>, vector<8x8xf32>, vector<8x8xf32> -> vector<8x8xf32>
    %cst_20 = arith.constant dense<0xFF800000> : vector<8xf32>
    %55 = vector.multi_reduction <maximumf>, %54, %cst_20 [1] : vector<8x8xf32> to vector<8xf32>
    %56 = vector.shape_cast %55 : vector<8xf32> to vector<8x1xf32>
    %57 = vector.broadcast %56 : vector<8x1xf32> to vector<8x8xf32>
    %58 = arith.subf %54, %57 : vector<8x8xf32>
    %59 = math.exp %58 : vector<8x8xf32>
    %cst_21 = arith.constant dense<0.000000e+00> : vector<8xf32>
    %60 = vector.multi_reduction <add>, %59, %cst_21 [1] : vector<8x8xf32> to vector<8xf32>
    %61 = vector.shape_cast %60 : vector<8xf32> to vector<8x1xf32>
    %62 = tpu.reciprocal %61 {approx = true} : vector<8x1xf32> -> vector<8x1xf32>
    %63 = vector.broadcast %62 : vector<8x1xf32> to vector<8x8xf32>
    %64 = arith.mulf %59, %63 : vector<8x8xf32>
    %cst_22 = arith.constant dense<0.000000e+00> : vector<8x8xf32>
    %65 = tpu.matmul %64, %53, %cst_22 {dimension_numbers = #tpu.dot_dimension_numbers<[1], [0], [0], [1], [0, 0, 1, 1], [], []>} : vector<8x8xf32>, vector<8x8xf32>, vector<8x8xf32> -> vector<8x8xf32>
    %66 = tpu.concatenate %20, %35, %50, %65 in 1 : vector<8x8xf32>, vector<8x8xf32>, vector<8x8xf32>, vector<8x8xf32> -> vector<8x32xf32>
    %c0_23 = arith.constant 0 : index
    %c0_24 = arith.constant 0 : index
    %c0_25 = arith.constant 0 : index
    %67 = vector.load %arg4[%c0_23, %c0_24, %c0_25] : memref<1x8x32xf32, #tpu.memory_space<vmem>>, vector<1x8x32xf32>
    %68 = vector.shape_cast %67 : vector<1x8x32xf32> to vector<8x32xf32>
    %69 = vector.shape_cast %66 : vector<8x32xf32> to vector<1x8x32xf32>
    tpu.vector_store %arg4[%c0_23, %c0_24, %c0_25], %69 {strides = array<i32>} : memref<1x8x32xf32, #tpu.memory_space<vmem>>, vector<1x8x32xf32>,
    return
  }
  func.func @transform_0(%arg0: i32) -> (i32, i32, i32) {
    %c0_i32 = arith.constant 0 : i32
    %c0_i32_0 = arith.constant 0 : i32
    %c0_i32_1 = arith.constant 0 : i32
    return %arg0, %c0_i32, %c0_i32_0 : i32, i32, i32
  }
  func.func @transform_1(%arg0: i32) -> (i32, i32, i32) {
    %c0_i32 = arith.constant 0 : i32
    %c0_i32_0 = arith.constant 0 : i32
    %c0_i32_1 = arith.constant 0 : i32
    return %arg0, %c0_i32, %c0_i32_0 : i32, i32, i32
  }
  func.func @transform_2(%arg0: i32) -> (i32, i32, i32) {
    %c0_i32 = arith.constant 0 : i32
    %c0_i32_0 = arith.constant 0 : i32
    %c0_i32_1 = arith.constant 0 : i32
    return %arg0, %c0_i32, %c0_i32_0 : i32, i32, i32
  }
  func.func @transform_3(%arg0: i32) -> (i32, i32, i32) {
    %c0_i32 = arith.constant 0 : i32
    %c0_i32_0 = arith.constant 0 : i32
    %c0_i32_1 = arith.constant 0 : i32
    return %arg0, %c0_i32, %c0_i32_0 : i32, i32, i32
  }
}

</mosaic_0001>

<bundles_post_ra>
// kernel: _lambda_.3
= control target key start
LH: loop header
LB: loop body
LE: loop exit
PB: predicated region body
PF: predicated region fallthrough
CT: control target
= control target key end

     0   :  { %vm27_vm0 = vcmask 261120   ;;  %vm109_vm1 = vcmask 785408   ;;  %s191_s1 = inlined_call_operand.vmem [shape: f32[32,96], index: 1, kind: input, shape index: {}]   ;;  %s192_s0 = inlined_call_operand.vmem [shape: f32[16,32], index: 0, kind: input, shape index: {}]   ;;  %s193_s2 = inlined_call_operand.vmem [shape: f32[1,96], index: 2, kind: input, shape index: {}]   ;;  %s194_s3 = inlined_call_operand.vmem [shape: f32[16,96], index: 3, kind: output, shape index: {}]  }
   0x1   :  { %v16_v0 = vld [vmem:[%s191_s1] sm:$0xff]  ;;  %v17_v1 = vld [vmem:[%s191_s1 + $0x8] sm:$0xff]  ;;  %v18_v2 = vld [vmem:[%s191_s1 + $0x10] sm:$0xff] }
   0x2   :  { %v136_v3 = vpack.c.bf16 %v17_v1, %v16_v0  ;;  %v19_v4 = vld [vmem:[%s191_s1 + $0x18] sm:$0xff]  ;;  %v14_v5 = vld [vmem:[%s192_s0] sm:$0xff]  ;;  %v15_v7 = vld [vmem:[%s192_s0 + $0x8] sm:$0xff] }
   0x3   :  { %v140_v6 = vpack.c.bf16 %v19_v4, %v18_v2  ;;  %133 = vmatprep.mubr.msk.f32.mxu0 %vm27_vm0, %v14_v5  ;;  %v116_v8 = vld [vmem:[%s193_s2] ss:$0 sm:$0xff] }
   0x4   :  { %137 = vmatprep.subr.bf16.mxu0 %v136_v3 }
   0x5   :  { %139 = vmatpush3.bf16.msra.mxu0 %v136_v3 }
   0x6   :  { %141 = vmatprep.subr.bf16.mxu0 %v140_v6 }
   0x9   :  { %143 = vmatpush3.bf16.msra.mxu0 %v140_v6 }
   0xc   :  { %134 = vmatmul.mubr.msk.f32.vlgmr.msra.gmra.mrb[0].mxu0 %vm27_vm0, %v15_v7 }
  0xdf   :  { %v135_v9 = vpop.f32.mrb[0].mxu0 }
  0xe0   :  { %v106_v10 = vadd.f32 %v135_v9, %v116_v8  ;;  %v100_v11 = vpop.f32.mrb[1].mxu0 }
  0xe1   :  { %v101_v12 = vadd.f32 %v116_v8, %v100_v11 }
  0xe2   :  { %111 = vst.msk [vmem:[%s194_s3 + $0x8] sm:$0xff] %vm109_vm1, %v106_v10 }
  0xe3   :  { %110 = vst.msk [vmem:[%s194_s3] sm:$0xff] %vm109_vm1, %v101_v12 }

// kernel: _lambda_.5
= control target key start
LH: loop header
LB: loop body
LE: loop exit
PB: predicated region body
PF: predicated region fallthrough
CT: control target
= control target key end

     0   :  { %vm28_vm0 = vcmask 261120   ;;  %s243_s0 = inlined_call_operand.vmem [shape: f32[16,32], index: 0, kind: input, shape index: {}]   ;;  %s244_s1 = inlined_call_operand.vmem [shape: f32[32,32], index: 1, kind: input, shape index: {}]   ;;  %s245_s2 = inlined_call_operand.vmem [shape: f32[1,32], index: 2, kind: input, shape index: {}]   ;;  %s246_s3 = inlined_call_operand.hbm [shape: f32[16,32], index: 3, kind: output, shape index: {}]  }
   0x1   :  { %v17_v0 = vld [vmem:[%s244_s1] sm:$0xff]  ;;  %v18_v1 = vld [vmem:[%s244_s1 + $0x8] sm:$0xff]  ;;  %v19_v2 = vld [vmem:[%s244_s1 + $0x10] sm:$0xff] }
   0x2   :  { %v148_v3 = vpack.c.bf16 %v18_v1, %v17_v0  ;;  %v20_v4 = vld [vmem:[%s244_s1 + $0x18] sm:$0xff]  ;;  %v15_v5 = vld [vmem:[%s243_s0] sm:$0xff] }
   0x3   :  { %v152_v6 = vpack.c.bf16 %v20_v4, %v19_v2  ;;  %145 = vmatprep.mubr.msk.f32.mxu0 %vm28_vm0, %v15_v5 }
   0x4   :  { %8 = vsyncpa [#allocation3], 0  ;;  %149 = vmatprep.subr.bf16.mxu0 %v148_v3  ;;  %v16_v7 = vld [vmem:[%s243_s0 + $0x8] sm:$0xff]  ;;  %v128_v8 = vld [vmem:[%s245_s2] ss:$0 sm:$0xff]  ;;  %s183_s25 = smov [#allocation2]  }
   0x5   :  { %151 = vmatpush3.bf16.msra.mxu0 %v148_v3  ;;  %s117_s26 = sshll.u32 %s183_s25, 4  ;;  %s118_s26 = int_to_ptr.vmem [resolvable:$true] %s117_s26 }
   0x6   :  { %153 = vmatprep.subr.bf16.mxu0 %v152_v6  ;;  %s159_s27 = scalar_lea.vmem %s118_s26, 256  ;;  %p164_p1 = scmp.lt.s32.totalorder %s118_s26, %s118_s26 }
   0x7   :  { %p160_p0 = scmp.ne.s32.totalorder %s118_s26, %s159_s27  ;;  %p165_p2 = scmp.lt.s32.totalorder %s159_s27, %s159_s27 }
   0x9   :  { %155 = vmatpush3.bf16.msra.mxu0 %v152_v6  ;;  %p166_p3 = por %p165_p2, %p164_p1 }
   0xb   :  { %p167_p4 = pnand %p166_p3, %p160_p0 }
   0xc   :  { %146 = vmatmul.mubr.msk.f32.vlgmr.msra.gmra.mrb[0].mxu0 %vm28_vm0, %v16_v7 }
  0xdf   :  { %v147_v9 = vpop.f32.mrb[0].mxu0 }
  0xe0   :  { %v107_v10 = vadd.f32 %v147_v9, %v128_v8  ;;  %v101_v11 = vpop.f32.mrb[1].mxu0 }
  0xe1   :  { %v102_v12 = vadd.f32 %v128_v8, %v101_v11 }
  0xe2   :  { %111 = vst.msk [vmem:[#allocation2 + $0x8] sm:$0xff] %vm28_vm0, %v107_v10 }
  0xe3   :  { %110 = vst.msk [vmem:[#allocation2] sm:$0xff] %vm28_vm0, %v102_v12 }
  0xe4   :  { %170 = shalt.err (!%p167_p4)
}
  0xe5   :  { %s171_s28 = scalar_lea.hbm %s246_s3, 256 }
  0xe6   :  { %p172_p5 = scmp.ne.s32.totalorder %s246_s3, %s171_s28  ;;  %p175_p6 = scmp.lt.u32.totalorder %s171_s28, %s246_s3 }
  0xe8   :  { %p177_p7 = pnand %p175_p6, %p172_p5 }
  0xea   :  { %180 = shalt.err (!%p177_p7)
}
  0xeb   :  { %s184_s6 = smov 128   ;;  %s185_s7 = smov 8  }
  0xec   :  { %123 = dma.vmem_to_hbm [thread:$0]  %s118_s26, 256, %s246_s3, [#allocation3], %s184_s6, %s184_s6, %s185_s7  }
  0xed   :  { %181 = dma.done.wait [#allocation3], 256  }
  0xee   :  { %182 = vsyncadd [#allocation3], 4294967040 }
  0xef   :  { %127 = vsyncpa [#allocation3], 1 }

// kernel: _lambda_.4
= control target key start
LH: loop header
LB: loop body
LE: loop exit
PB: predicated region body
PF: predicated region fallthrough
CT: control target
= control target key end

     0   :  { %s1103_s12 = smov 0   ;;  %s1189_s0 = inlined_call_operand.vmem [shape: f32[2,8,32], index: 0, kind: input, shape index: {}]   ;;  %s1190_s1 = inlined_call_operand.vmem [shape: f32[2,8,32], index: 1, kind: input, shape index: {}]   ;;  %s1191_s2 = inlined_call_operand.vmem [shape: f32[2,8,32], index: 2, kind: input, shape index: {}]   ;;  %s1192_s3 = inlined_call_operand.vmem [shape: f32[2,8,32], index: 3, kind: output, shape index: {}]  }
   0x1 LB: > { %s956_s13 = sadd.s32 4294967295, %s1073_s12   ;;  %p960_p0 = scmp.ge.s32.totalorder %s1073_s12, 1  ;;  %s1073_s12 = sphi %s1103_s12, %s13_s12  }
   0x2   : > { %p154_p1 = scmp.lt.s32.totalorder %s1073_s12, 3 }
   0x4   : > { %p155_p2 = pnand %p960_p0, %p154_p1 }
   0x5   : > { %p184_p3 = scmp.lt.s32.totalorder (!%p155_p2), %s956_s13, 1  ;;  %v1075_v0 = vmov (!%p155_p2), 0.0   ;;  %vm1076_vm0 = vmmov (!%p155_p2), 0   ;;  %vm203_vm1 = vcmask (!%p155_p2), 64512   ;;  %s1077_s21 = smov (!%p155_p2), 120   ;;  %vm873_vm2 = vcmask (!%p155_p2), 130048  }
   0x6   : > { %158 = sbr.rel (%p155_p2) target bundleno = 1458 (0x5b2), region = 32  ;;  %995 = vmatprep.subr.mxu0 (!%p155_p2), %v1075_v0  ;;  %997 = vmatprep.mubr.msk.f32.mxu0 (!%p155_p2), %vm1076_vm0, %v1075_v0  ;;  %s1078_s22 = smov (!%p155_p2), 112   ;;  %vm875_vm3 = vcmask (!%p155_p2), 195584   ;;  %vm877_vm4 = vcmask (!%p155_p2), 261120  }
   0x7   : > { %1000 = vmatprep.subr.mxu1 (!%p155_p2), %v1075_v0  ;;  %1002 = vmatprep.mubr.msk.f32.mxu1 (!%p155_p2), %vm1076_vm0, %v1075_v0  ;;  %s1079_s23 = smov (!%p155_p2), 104   ;;  %s1080_s27 = smov (!%p155_p2), 8  }
   0x8   : > { %s1081_s28 = smov (!%p155_p2), 16   ;;  %s1082_s29 = smov (!%p155_p2), 24  }
   0xd   : > { %s1194_s13 = smov (!%p184_p3, %s956_s13), 1 }
   0xe   : > { %s1117_s14 = sshll.u32 %s1194_s13, 3 }
   0xf   : > { %s191_s17 = scalar_lea.vmem %s1190_s1, %s1117_s14  ;;  %s187_s20 = scalar_lea.vmem %s1189_s0, %s1117_s14 }
  0x10   : > { %v201_v1 = vld [vmem:[%s191_s17] sm:$0xff]  ;;  %s195_s26 = scalar_lea.vmem %s1191_s2, %s1117_s14  ;;  %s199_s5 = scalar_lea.vmem %s1192_s3, %s1117_s14 }
  0x11   : > { %996 = vmatpush3.xpose.msk.msra.mxu0 %vm203_vm1, %v201_v1  ;;  %v200_v2 = vld [vmem:[%s187_s20] sm:$0xff]  ;;  %366 = vrot.lane.b32.xlu1 %v201_v1, %s1077_s21 }
  0x12   : > { %1010 = vmatprep.subr.mxu0 %v1075_v0  ;;  %v202_v11 = vld [vmem:[%s195_s26] sm:$0xff] }
  0x13   : > { %1001 = vmatpush3.msra.mxu1 %v202_v11 }
  0x14   : > { %998 = vmatmul.mubr.msk.f32.vlgmr.msra.gmra.mrb[0].mxu0 %vm203_vm1, %v200_v2  ;;  %1005 = vmatprep.subr.mxu1 %v1075_v0 }
  0x15   : > { %1012 = vmatprep.mubr.msk.f32.mxu0 %vm1076_vm0, %v1075_v0  ;;  %364 = vrot.lane.b32.xlu1 %v200_v2, %s1077_s21 }
  0x19   : > { %530 = vrot.lane.b32.xlu1 %v200_v2, %s1078_s22 }
  0x1d   : > { %697 = vrot.lane.b32.xlu1 %v201_v1, %s1079_s23 }
  0x21   : > { %695 = vrot.lane.b32.xlu1 %v200_v2, %s1079_s23 }
  0x83   : > { %v367_v12 = vpop.permute.xlu1 %366 }
  0x87   : > { %v365_v14 = vpop.permute.xlu1 %364 }
  0x8b   : > { %v531_v16 = vpop.permute.xlu1 %530 }
  0x8f   : > { %v698_v19 = vpop.permute.xlu1 %697 }
  0x93   : > { %v696_v20 = vpop.permute.xlu1 %695 }
  0xe7   : > { %v276_v3 = vpop.f32.mrb[0].mxu0 }
  0xe8   : > { %v999_v4 = vpop.f32.mrb[1].mxu0  ;;  %v280_v5 = vsel %vm203_vm1, %v276_v3, -inf }
  0xe9   : > { %281 = vmax.xlane.f32.xlu0 %v280_v5 }
 0x176   : > { %v282_v6 = vpop.xlane.xlu0 %281 }
 0x177   : > { %v283_v7 = vsub.f32 %v276_v3, %v282_v6 }
 0x179   : > { %v284_v8 = vmul.f32 1.442695, %v283_v7 }
 0x17b   : > { %1051 = vpow2.f32 %v284_v8 }
 0x185   : > { %v1052_v9 = vpop.eup %1051 }
 0x186   : > { %v286_v10 = vsel %vm203_vm1, %v1052_v9, 0.0 }
 0x187   : > { %287 = vadd.xlane.f32.xlu0 %v286_v10 }
 0x19d   : > { %532 = vrot.lane.b32.xlu0 %v201_v1, %s1078_s22 }
 0x214   : > { %v288_v13 = vpop.xlane.xlu0 %287 }
 0x215   : > { %1053 = vrcp.f32 %v288_v13 }
 0x218   : > { %v533_v18 = vpop.permute.xlu0 %532 }
 0x21f   : > { %v1054_v15 = vpop.eup %1053 }
 0x220   : > { %v290_v17 = vmul.f32 %v1054_v15, %v1052_v9 }
 0x222   : > { %1003 = vmatmul.mubr.msk.f32.vlgmr.msra.gmra.mrb[0].mxu1 %vm203_vm1, %v290_v17 }
 0x223   : > { %1006 = vmatpush3.xpose.msk.msra.mxu1 %vm203_vm1, %v367_v12  ;;  %1007 = vmatprep.mubr.msk.f32.mxu1 %vm1076_vm0, %v1075_v0 }
 0x224   : > { %1015 = vmatprep.subr.mxu1 %v1075_v0 }
 0x226   : > { %1008 = vmatmul.mubr.msk.f32.vlgmr.msra.gmra.mrb[2].mxu1 %vm203_vm1, %v365_v14 }
 0x227   : > { %1016 = vmatpush3.xpose.msk.msra.mxu1 %vm203_vm1, %v533_v18  ;;  %1017 = vmatprep.mubr.msk.f32.mxu1 %vm1076_vm0, %v1075_v0 }
 0x228   : > { %1025 = vmatprep.subr.mxu1 %v1075_v0 }
 0x22a   : > { %1018 = vmatmul.mubr.msk.f32.vlgmr.msra.gmra.mrb[4].mxu1 %vm203_vm1, %v531_v16 }
 0x22b   : > { %1026 = vmatpush3.xpose.msk.msra.mxu1 %vm203_vm1, %v698_v19  ;;  %1027 = vmatprep.mubr.msk.f32.mxu1 %vm1076_vm0, %v1075_v0 }
 0x22e   : > { %1028 = vmatmul.mubr.msk.f32.vlgmr.msra.gmra.mrb[6].mxu1 %vm203_vm1, %v696_v20 }
 0x2f5   : > { %v1160_v21 = vpop.f32.mrb[0].mxu1 }
 0x2f6   : > { %v1004_v22 = vpop.f32.mrb[1].mxu1 }
 0x2f9   : > { %v438_v23 = vpop.f32.mrb[2].mxu1 }
 0x2fa   : > { %v1009_v24 = vpop.f32.mrb[3].mxu1  ;;  %v442_v25 = vsel %vm203_vm1, %v438_v23, -inf }
 0x2fb   : > { %443 = vmax.xlane.f32.xlu1 %v442_v25 }
 0x2fd   : > { %v604_v26 = vpop.f32.mrb[4].mxu1 }
 0x2fe   : > { %v608_v27 = vsel %vm203_vm1, %v604_v26, -inf  ;;  %v1019_v28 = vpop.f32.mrb[5].mxu1 }
 0x2ff   : > { %609 = vmax.xlane.f32.xlu0 %v608_v27 }
 0x301   : > { %v769_v29 = vpop.f32.mrb[6].mxu1 }
 0x302   : > { %v773_v30 = vsel %vm203_vm1, %v769_v29, -inf  ;;  %v1029_v31 = vpop.f32.mrb[7].mxu1 }
 0x303   : > { %774 = vmax.xlane.f32.xlu1 %v773_v30 }
 0x388   : > { %v444_v32 = vpop.xlane.xlu1 %443 }
 0x389   : > { %v445_v33 = vsub.f32 %v438_v23, %v444_v32 }
 0x38b   : > { %v446_v34 = vmul.f32 1.442695, %v445_v33 }
 0x38c   : > { %v610_v35 = vpop.xlane.xlu0 %609 }
 0x38d   : > { %1055 = vpow2.f32 %v446_v34  ;;  %v611_v36 = vsub.f32 %v604_v26, %v610_v35 }
 0x38f   : > { %v612_v37 = vmul.f32 1.442695, %v611_v36 }
 0x390   : > { %v775_v42 = vpop.xlane.xlu1 %774 }
 0x391   : > { %1057 = vpow2.f32 %v612_v37  ;;  %v776_v43 = vsub.f32 %v769_v29, %v775_v42 }
 0x393   : > { %v777_v44 = vmul.f32 1.442695, %v776_v43 }
 0x395   : > { %1059 = vpow2.f32 %v777_v44 }
 0x397   : > { %v1056_v38 = vpop.eup %1055 }
 0x398   : > { %v448_v39 = vsel %vm203_vm1, %v1056_v38, 0.0 }
 0x399   : > { %449 = vadd.xlane.f32.xlu1 %v448_v39 }
 0x39b   : > { %v1058_v40 = vpop.eup %1057 }
 0x39c   : > { %v614_v41 = vsel %vm203_vm1, %v1058_v40, 0.0 }
 0x39d   : > { %615 = vadd.xlane.f32.xlu0 %v614_v41 }
 0x39f   : > { %v1060_v45 = vpop.eup %1059 }
 0x3a0   : > { %v779_v46 = vsel %vm203_vm1, %v1060_v45, 0.0 }
 0x3aa   : > { %619 = vrot.lane.b32.xlu1 %v202_v11, %s1078_s22 }
 0x3b3   : > { %454 = vrot.lane.b32.xlu0 %v202_v11, %s1077_s21 }
 0x3ce   : > { %780 = vadd.xlane.f32.xlu1 %v779_v46 }
 0x3df   : > { %784 = vrot.lane.b32.xlu1 %v202_v11, %s1079_s23 }
 0x426   : > { %v450_v47 = vpop.xlane.xlu1 %449 }
 0x427   : > { %1061 = vrcp.f32 %v450_v47 }
 0x42a   : > { %v616_v48 = vpop.xlane.xlu0 %615  ;;  %v620_v52 = vpop.permute.xlu1 %619 }
 0x42b   : > { %1063 = vrcp.f32 %v616_v48 }
 0x42e   : > { %v455_v49 = vpop.permute.xlu0 %454 }
 0x42f   : > { %1011 = vmatpush3.msra.mxu0 %v455_v49 }
 0x430   : > { %1020 = vmatprep.subr.mxu0 %v1075_v0 }
 0x431   : > { %v1062_v50 = vpop.eup %1061 }
 0x432   : > { %v452_v51 = vmul.f32 %v1062_v50, %v1056_v38 }
 0x434   : > { %1013 = vmatmul.mubr.msk.f32.vlgmr.msra.gmra.mrb[2].mxu0 %vm203_vm1, %v452_v51 }
 0x435   : > { %v1064_v53 = vpop.eup %1063  ;;  %1021 = vmatpush3.msra.mxu0 %v620_v52  ;;  %1022 = vmatprep.mubr.msk.f32.mxu0 %vm1076_vm0, %v1075_v0 }
 0x436   : > { %v618_v54 = vmul.f32 %v1064_v53, %v1058_v40  ;;  %1030 = vmatprep.subr.mxu0 %v1075_v0 }
 0x438   : > { %1023 = vmatmul.mubr.msk.f32.vlgmr.msra.gmra.mrb[4].mxu0 %vm203_vm1, %v618_v54 }
 0x439   : > { %1032 = vmatprep.mubr.msk.f32.mxu0 %vm1076_vm0, %v1075_v0 }
 0x45b   : > { %v781_v55 = vpop.xlane.xlu1 %780 }
 0x45c   : > { %1065 = vrcp.f32 %v781_v55 }
 0x45f   : > { %v785_v56 = vpop.permute.xlu1 %784 }
 0x460   : > { %1031 = vmatpush3.msra.mxu0 %v785_v56 }
 0x466   : > { %v1066_v57 = vpop.eup %1065 }
 0x467   : > { %v783_v58 = vmul.f32 %v1066_v57, %v1060_v45 }
 0x469   : > { %1033 = vmatmul.mubr.msk.f32.vlgmr.msra.gmra.mrb[6].mxu0 %vm203_vm1, %v783_v58 }
 0x507   : > { %v526_v59 = vpop.f32.mrb[2].mxu0 }
 0x508   : > { %861 = vrot.lane.b32.xlu0 %v526_v59, %s1080_s27  ;;  %v1014_v60 = vpop.f32.mrb[3].mxu0 }
 0x50b   : > { %v691_v61 = vpop.f32.mrb[4].mxu0 }
 0x50c   : > { %865 = vrot.lane.b32.xlu1 %v691_v61, %s1081_s28  ;;  %v1024_v62 = vpop.f32.mrb[5].mxu0 }
 0x53c   : > { %v856_v63 = vpop.f32.mrb[6].mxu0 }
 0x53d   : > { %869 = vrot.lane.b32.xlu0 %v856_v63, %s1082_s29  ;;  %v1034_v0 = vpop.f32.mrb[7].mxu0 }
 0x57a   : > { %v862_v1 = vpop.permute.xlu0 %861 }
 0x57b   : > { %v872_v3 = vsel %vm203_vm1, %v1160_v21, %v862_v1 }
 0x57e   : > { %v866_v2 = vpop.permute.xlu1 %865 }
 0x57f   : > { %v874_v4 = vsel %vm873_vm2, %v872_v3, %v866_v2 }
 0x5af   : > { %v870_v5 = vpop.permute.xlu0 %869 }
 0x5b0   : > { %v876_v6 = vsel %vm875_vm3, %v874_v4, %v870_v5 }
 0x5b1   : > { %878 = vst.msk [vmem:[%s199_s5] sm:$0xff] %vm877_vm4, %v876_v6 }
 0x5b2 PF: > { %s13_s12 = sadd.s32 1, %s1073_s12  }
 0x5b3   : > { %p10_p4 = scmp.ge.s32.totalorder %s13_s12, 4  }
 0x5b5   :  { %12 = sbr.rel (!%p10_p4) target bundleno = 1 (0x1), region = 68 }

</bundles_post_ra>
